<compile_context>
chip_gen: v7x
topology: tpu7x:2x2x1
jax: 0.10.0
libtpu: 0.0.40
codegen_flags: <defaults>
</compile_context>

<pallas_src>
import functools

import jax
import jax.numpy as jnp
from jax.experimental import pallas as pl
from jax.experimental.pallas import tpu as pltpu

_HIGHEST = jax.lax.Precision.HIGHEST


def _prec(dtype):
    # Full-precision MXU passes only for the f32 validation path; the bf16 perf path
    # uses native single-pass bf16 MXU with f32 accumulation.
    return _HIGHEST if dtype == jnp.float32 else None


# ----------------------------- in-kernel helpers ------------------------------

def _softmax_last(scores):
    """Stable softmax over the last axis of an f32 (TB, 1, S) tile (no padding)."""
    m = jnp.max(scores, axis=-1, keepdims=True)
    e = jnp.exp(scores - m)
    denom = jnp.sum(e, axis=-1, keepdims=True)
    r = pl.reciprocal(denom, approx=True)          # EUP slot
    r = r * (2.0 - denom * r)                      # one Newton step -> ~f32 accuracy
    return e * r


# ----------------------------- kernels (TB batch rows per grid step) ----------

def _dot_general_kernel(q_ref, enc_ref, out_ref):
    # Shared by 'dot' and 'general' ('general' is folded to a transformed query in
    # the wrapper).  scores[t,0,s] = sum_h q[t,0,h] * enc[t,s,h]  (batched MXU).
    q = q_ref[...]                                                   # (TB, 1, H)
    enc = enc_ref[...]                                               # (TB, S, H)
    scores = jnp.einsum("tqh,tsh->tqs", q, enc,
                        precision=_prec(q.dtype),
                        preferred_element_type=jnp.float32)          # (TB, 1, S) f32
    out_ref[...] = _softmax_last(scores)


def _concat_kernel(hpart_ref, enc_ref, we_t_ref, v_ref, out_ref):
    # energy[t,s,:] = tanh(enc[t,s,:] @ We^T + (h[t] @ Wh^T + b));  score = v . energy
    enc = enc_ref[...]                                               # (TB, S, H)
    prec = _prec(enc.dtype)
    e_part = jax.lax.dot_general(
        enc, we_t_ref[...], (((2,), (0,)), ((), ())),
        precision=prec, preferred_element_type=jnp.float32)          # (TB, S, H) f32
    energy = jnp.tanh(e_part + hpart_ref[...])                       # f32 EUP tanh
    energy = energy.astype(enc.dtype)                                # MXU-native dtype
    tb, _, h = hpart_ref.shape
    v_b = jnp.broadcast_to(v_ref[...][None], (tb, 1, h)).astype(enc.dtype)
    scores = jnp.einsum("tqh,tsh->tqs", v_b, energy,
                        precision=prec, preferred_element_type=jnp.float32)
    out_ref[...] = _softmax_last(scores)


# ----------------------------- wrapper ----------------------------------------

def prepare_params(method, hidden_size, params):
    """One-time parameter preprocessing (transposes / splits hoisted out of forward)."""
    H = hidden_size
    if method == "dot":
        return ()
    if method == "general":
        # score = (h @ W) . enc (+ h.b, constant over S -> dropped under softmax).
        return (params["attn_w"],)                                   # (H, H)
    w = params["attn_w"]                                             # (H, 2H)
    return (w[:, :H].T,                                              # Wh^T -> wrapper
            params["attn_b"].reshape(1, H),                          # b    -> wrapper
            w[:, H:].T,                                              # We^T -> kernel
            params["v"].reshape(1, H))                               # v    -> kernel


def _batch_blocking(B):
    """TB rows per grid step (<=8) and >=2 grid steps when B>=2 (feeds both v7x TCs)."""
    if B <= 1:
        return 1, 1
    steps = max(2, -(-B // 8))
    tb = -(-B // steps)
    return tb, steps


@functools.partial(jax.jit, static_argnums=(0,), static_argnames=("compute_dtype",))
def attn_forward(method, hidden, encoder_outputs, *prepared,
                 compute_dtype=jnp.bfloat16):
    """Pallas implementation of Attn.forward.

    hidden: (1,B,H) f32; encoder_outputs: (S,B,H) f32 -> (B,1,S) f32 attention weights.
    """
    assert method in ("dot", "general", "concat")
    S, B, H = encoder_outputs.shape
    tb, steps = _batch_blocking(B)
    Bp = tb * steps
    cdt = compute_dtype

    h2 = hidden[0]                                                   # (B, H) f32
    enc = jnp.transpose(encoder_outputs, (1, 0, 2)).astype(cdt)      # (B, S, H)

    if method == "concat":
        wh_t, b, we_t, v = prepared
        lead = (jnp.dot(h2, wh_t, precision=_HIGHEST) + b)[:, None, :]   # (B,1,H) f32
        extra_inputs = (we_t.astype(cdt), v.astype(cdt))
        extra_specs = (pl.BlockSpec((H, H), lambda b_: (0, 0)),
                       pl.BlockSpec((1, H), lambda b_: (0, 0)))
        kernel = _concat_kernel
    else:
        q = h2 if method == "dot" else jnp.dot(h2, prepared[0], precision=_HIGHEST)
        lead = q.astype(cdt)[:, None, :]                             # (B, 1, H) cdt
        extra_inputs = ()
        extra_specs = ()
        kernel = _dot_general_kernel

    if Bp != B:                                                      # tiny, rows sliced off
        lead = jnp.pad(lead, ((0, Bp - B), (0, 0), (0, 0)))
        enc = jnp.pad(enc, ((0, Bp - B), (0, 0), (0, 0)))

    in_specs = [pl.BlockSpec((tb, 1, H), lambda b_: (b_, 0, 0)),
                pl.BlockSpec((tb, S, H), lambda b_: (b_, 0, 0)),
                *extra_specs]
    allow_fusion = [False, True] + [False] * len(extra_inputs)       # fuse enc transpose

    out = pl.pallas_call(
        kernel,
        out_shape=jax.ShapeDtypeStruct((Bp, 1, S), jnp.float32),
        grid=(steps,),
        in_specs=in_specs,
        out_specs=pl.BlockSpec((tb, 1, S), lambda b_: (b_, 0, 0)),
        compiler_params=pltpu.CompilerParams(
            dimension_semantics=("parallel",),
            vmem_limit_bytes=32 * 1024 * 1024,
            allow_input_fusion=allow_fusion),
    )(lead, enc, *extra_inputs)
    return out[:B]                                                   # (B, 1, S) f32


# ----------------------------- reference (pure JAX, PyTorch-faithful) ---------

def attn_reference(method, hidden, encoder_outputs, params):
    h = hidden                                                       # (1, B, H)
    e = encoder_outputs                                              # (S, B, H)
    if method == "dot":
        scores = jnp.sum(h * e, axis=2)                              # (S, B)
    elif method == "general":
        energy = jnp.einsum("sbj,ij->sbi", e, params["attn_w"],
                            precision=_HIGHEST) + params["attn_b"]
        scores = jnp.sum(h * energy, axis=2)
    else:
        cat = jnp.concatenate([jnp.broadcast_to(h, e.shape), e], axis=2)
        energy = jnp.tanh(jnp.einsum("sbj,ij->sbi", cat, params["attn_w"],
                                     precision=_HIGHEST) + params["attn_b"])
        scores = jnp.sum(params["v"] * energy, axis=2)
    scores = scores.T                                                # (B, S)
    return jax.nn.softmax(scores, axis=1)[:, None, :]                # (B, 1, S)


# ----------------------------- main --------------------------------------------

if __name__ == "__main__":
    B, S, H = 2, 8, 32
    key = jax.random.PRNGKey(0)
    k_h, k_e, k_w1, k_b1, k_w2, k_b2, k_v = jax.random.split(key, 7)

    hidden = jax.random.normal(k_h, (1, B, H), dtype=jnp.float32)
    encoder_outputs = jax.random.normal(k_e, (S, B, H), dtype=jnp.float32)

    params_general = {
        "attn_w": jax.random.normal(k_w1, (H, H), dtype=jnp.float32) * 0.1,
        "attn_b": jax.random.normal(k_b1, (H,), dtype=jnp.float32) * 0.1,
    }
    params_concat = {
        "attn_w": jax.random.normal(k_w2, (H, 2 * H), dtype=jnp.float32) * 0.1,
        "attn_b": jax.random.normal(k_b2, (H,), dtype=jnp.float32) * 0.1,
        "v": jax.random.normal(k_v, (H,), dtype=jnp.float32) * 0.1,
    }
    all_params = {"dot": {}, "general": params_general, "concat": params_concat}

    ok = True
    for method in ("dot", "general", "concat"):
        prepared = prepare_params(method, H, all_params[method])     # one-time prep
        ref = attn_reference(method, hidden, encoder_outputs, all_params[method])

        # f32 validation path: exact algorithm check at tight tolerance.
        out32 = attn_forward(method, hidden, encoder_outputs, *prepared,
                             compute_dtype=jnp.float32)
        out32 = jax.block_until_ready(out32)
        assert out32.shape == (B, 1, S), (method, out32.shape)
        if not jnp.allclose(out32, ref, atol=1e-5, rtol=1e-5):
            ok = False
            print(f"MISMATCH (f32) method={method}: "
                  f"max_abs_err={float(jnp.max(jnp.abs(out32 - ref))):.3e}")

        # bf16 perf path (default): half the HBM bytes on the dominant enc stream.
        # Checked at a tolerance consistent with bf16 operand rounding of the scores;
        # softmax itself stays f32 so rows must still sum to 1.
        out16 = attn_forward(method, hidden, encoder_outputs, *prepared,
                             compute_dtype=jnp.bfloat16)
        out16 = jax.block_until_ready(out16)
        assert out16.shape == (B, 1, S), (method, out16.shape)
        row_sums = jnp.sum(out16, axis=-1)
        if (not jnp.allclose(out16, ref, atol=8e-2)
                or not jnp.allclose(row_sums, 1.0, atol=1e-3)):
            ok = False
            print(f"MISMATCH (bf16) method={method}: "
                  f"max_abs_err={float(jnp.max(jnp.abs(out16 - ref))):.3e}")

    if ok:
        print("KERNEL_OK")
</pallas_src>

<mosaic_0001>
module attributes {stable_mosaic.version = 11 : i64} {
  func.func @_dot_general_kernel(%arg0: i32, %arg1: memref<1x1x32xf32, #tpu.memory_space<vmem>>, %arg2: memref<1x8x32xf32, #tpu.memory_space<vmem>>, %arg3: memref<1x1x8xf32, #tpu.memory_space<vmem>>) attributes {dimension_semantics = [#tpu.dimension_semantics<parallel>], iteration_bounds = array<i64: 2>, scalar_prefetch = 0 : i64, scratch_operands = 0 : i64, tpu.core_type = #tpu.core_type<tc>, window_params = [{transform_indices = @transform_0, window_bounds = array<i64: 1, 1, 32>}, {transform_indices = @transform_1, window_bounds = array<i64: 1, 8, 32>}, {transform_indices = @transform_2, window_bounds = array<i64: 1, 1, 8>}]} {
    %c0 = arith.constant 0 : index
    %c0_0 = arith.constant 0 : index
    %c0_1 = arith.constant 0 : index
    %0 = vector.load %arg1[%c0, %c0_0, %c0_1] : memref<1x1x32xf32, #tpu.memory_space<vmem>>, vector<1x1x32xf32>
    %c0_2 = arith.constant 0 : index
    %c0_3 = arith.constant 0 : index
    %c0_4 = arith.constant 0 : index
    %1 = vector.load %arg2[%c0_2, %c0_3, %c0_4] : memref<1x8x32xf32, #tpu.memory_space<vmem>>, vector<1x8x32xf32>
    "tpu.trace_start"() <{level = 10 : i32, message = "tqh,tsh->tqs"}> : () -> ()
    %cst = arith.constant dense<0.000000e+00> : vector<1x1x8xf32>
    %2 = tpu.matmul %0, %1, %cst {dimension_numbers = #tpu.dot_dimension_numbers<[2], [2], [1], [1], [0, 0, 0, 1, 1, 1], [0], [0]>, precision = #tpu.contract_precision<fp32>} : vector<1x1x32xf32>, vector<1x8x32xf32>, vector<1x1x8xf32> -> vector<1x1x8xf32>
    "tpu.trace_stop"() : () -> ()
    %cst_5 = arith.constant dense<0xFF800000> : vector<1x1xf32>
    %3 = vector.multi_reduction <maximumf>, %2, %cst_5 [2] : vector<1x1x8xf32> to vector<1x1xf32>
    %4 = vector.shape_cast %3 : vector<1x1xf32> to vector<1x1x1xf32>
    %5 = vector.broadcast %4 : vector<1x1x1xf32> to vector<1x1x8xf32>
    %6 = arith.subf %2, %5 : vector<1x1x8xf32>
    %7 = math.exp %6 : vector<1x1x8xf32>
    %cst_6 = arith.constant dense<0.000000e+00> : vector<1x1xf32>
    %8 = vector.multi_reduction <add>, %7, %cst_6 [2] : vector<1x1x8xf32> to vector<1x1xf32>
    %9 = vector.shape_cast %8 : vector<1x1xf32> to vector<1x1x1xf32>
    %10 = tpu.reciprocal %9 {approx = true} : vector<1x1x1xf32> -> vector<1x1x1xf32>
    %11 = arith.mulf %9, %10 : vector<1x1x1xf32>
    %cst_7 = arith.constant 2.000000e+00 : f32
    %12 = vector.broadcast %cst_7 : f32 to vector<1x1x1xf32>
    %13 = arith.subf %12, %11 : vector<1x1x1xf32>
    %14 = arith.mulf %10, %13 : vector<1x1x1xf32>
    %15 = vector.broadcast %14 : vector<1x1x1xf32> to vector<1x1x8xf32>
    %16 = arith.mulf %7, %15 : vector<1x1x8xf32>
    %c0_8 = arith.constant 0 : index
    %c0_9 = arith.constant 0 : index
    %c0_10 = arith.constant 0 : index
    %17 = vector.load %arg3[%c0_8, %c0_9, %c0_10] : memref<1x1x8xf32, #tpu.memory_space<vmem>>, vector<1x1x8xf32>
    tpu.vector_store %arg3[%c0_8, %c0_9, %c0_10], %16 {strides = array<i32>} : memref<1x1x8xf32, #tpu.memory_space<vmem>>, vector<1x1x8xf32>,
    return
  }
  func.func @transform_0(%arg0: i32) -> (i32, i32, i32) {
    %c0_i32 = arith.constant 0 : i32
    %c0_i32_0 = arith.constant 0 : i32
    %c0_i32_1 = arith.constant 0 : i32
    return %arg0, %c0_i32, %c0_i32_0 : i32, i32, i32
  }
  func.func @transform_1(%arg0: i32) -> (i32, i32, i32) {
    %c0_i32 = arith.constant 0 : i32
    %c0_i32_0 = arith.constant 0 : i32
    %c0_i32_1 = arith.constant 0 : i32
    return %arg0, %c0_i32, %c0_i32_0 : i32, i32, i32
  }
  func.func @transform_2(%arg0: i32) -> (i32, i32, i32) {
    %c0_i32 = arith.constant 0 : i32
    %c0_i32_0 = arith.constant 0 : i32
    %c0_i32_1 = arith.constant 0 : i32
    return %arg0, %c0_i32, %c0_i32_0 : i32, i32, i32
  }
}

</mosaic_0001>

<bundles_post_ra>
// kernel: attn_forward.2
= control target key start
LH: loop header
LB: loop body
LE: loop exit
PB: predicated region body
PF: predicated region fallthrough
CT: control target
= control target key end

     0   :  { %7 = vsyncpa [#allocation3], 0  ;;  %s1001_s0 = inlined_call_operand.vmem [shape: f32[2,1,32], index: 0, kind: input, shape index: {}]   ;;  %s1002_s1 = inlined_call_operand.vmem [shape: f32[8,2,32], index: 1, kind: input, shape index: {}]   ;;  %s1003_s2 = inlined_call_operand.hbm [shape: f32[2,1,8], index: 2, kind: output, shape index: {}]  }
   0x1   :  { %9 = vsyncpa [#allocation3 + $0x1], 0  ;;  %s889_s9 = smov 0   ;;  %s891_s10 = smov 0  }
   0x2   :  { %s893_s11 = smov 0   ;;  %s895_s12 = smov 0  }
   0x3 LB: > { %s910_s13 = sadd.s32 4294967295, %s869_s12   ;;  %s703_s14 = sadd.s32 4294967294, %s869_s12   ;;  %s869_s12 = sphi %s895_s12, %s1009_s12   ;;  %s865_s11 = sphi %s893_s11, %s1008_s11   ;;  %s861_s10 = sphi %s891_s10, %s1007_s10   ;;  %s857_s9 = sphi %s889_s9, %s1006_s9  }
   0x4   : > { %s914_s15 = sadd.s32 1, %s869_s12   ;;  %s74_s16 = sadd.s32 1, %s865_s11 }
   0x5   : > { %s71_s17 = ssub.s32 %s869_s12, %s914_s15  ;;  %p84_p0 = scmp.ne.s32.totalorder %s865_s11, %s861_s10 }
   0x6   : > { %p72_p1 = scmp.eq.s32.totalorder %s71_s17, 0  ;;  %p85_p2 = scmp.eq.s32.totalorder %s910_s13, 1 }
   0x7   : > { %p90_p3 = scmp.ne.s32.totalorder %s861_s10, %s857_s9  ;;  %p91_p4 = scmp.eq.s32.totalorder %s703_s14, 1 }
   0x8   : > { %s925_s18 = scalar_select %p72_p1, %s865_s11, %s74_s16  }
   0x9   : > { %p927_p5 = por %p85_p2, %p84_p0  ;;  %p931_p6 = por %p91_p4, %p90_p3 }
   0xa   : > { %p706_p7 = scmp.ge.s32.totalorder %s869_s12, 1  ;;  %p122_p8 = scmp.lt.s32.totalorder %s869_s12, 3 }
   0xc   : > { %p123_p9 = pnand %p706_p7, %p122_p8 }
   0xd   : > { %p145_p10 = scmp.lt.s32.totalorder (!%p123_p9), %s910_s13, 1  ;;  %v871_v0 = vmov (!%p123_p9), 0.0   ;;  %vm872_vm0 = vmmov (!%p123_p9), 0   ;;  %vm157_vm1 = vcmask (!%p123_p9), 261120   ;;  %vm610_vm2 = vcmask (!%p123_p9), 57344   ;;  %s143_s29 = sand.u32 (!%p123_p9), 1, %s861_s10  }
   0xe   : > { %126 = sbr.rel (%p123_p9) target bundleno = 600 (0x258), region = 28  ;;  %738 = vmatprep.subr.mxu0 (!%p123_p9), %v871_v0  ;;  %740 = vmatprep.mubr.msk.f32.mxu0 (!%p123_p9), %vm872_vm0, %v871_v0  ;;  %s708_s30 = sshll.u32 (!%p123_p9), %s910_s13, 4 }
   0xf   : > { %723 = vmatprep.subr.mxu1 (!%p123_p9), %v871_v0  ;;  %725 = vmatprep.mubr.msk.f32.mxu1 (!%p123_p9), %vm872_vm0, %v871_v0  ;;  %s144_s3 = scalar_lea.vmem (!%p123_p9), [#allocation2], %s143_s29  ;;  %s958_s7 = scalar_lea.hbm (!%p123_p9), %s1003_s2, %s708_s30 }
  0x10   : > { %s639_s4 = sshll.u32 (!%p123_p9), %s144_s3, 4  ;;  %s627_s8 = scalar_lea.sflag (!%p123_p9), [#allocation3], %s143_s29  ;;  %s960_s4 = int_to_ptr.vmem [resolvable:$true] %s639_s4 }
  0x11   : > { %s807_s14 = scalar_lea.vmem (!%p123_p9), %s960_s4, 16 }
  0x12   : > { %p808_p11 = scmp.ne.s32.totalorder (!%p123_p9), %s960_s4, %s807_s14 }
  0x14   : > { %p809_p12 = pnand (!%p123_p9), %p808_p11, %p927_p5 }
  0x15   : > { %s146_s21 = scalar_select %p145_p10, %s910_s13, 1 }
  0x16   : > { %p810_p13 = pneg %p809_p12  ;;  %s873_s13 = smov [#allocation2]  }
  0x17   : > { %s707_s22 = sshll.u32 %s146_s21, 3  ;;  %s147_s25 = scalar_lea.vmem %s1001_s0, %s146_s21 }
  0x18   : > { %s151_s28 = scalar_lea.vmem %s1002_s1, %s707_s22  ;;  %v155_v1 = vld [vmem:[%s147_s25] sm:$0x1]  ;;  %s811_s16 = sshll.u32 %s873_s13, 4  ;;  %s812_s16 = int_to_ptr.vmem [resolvable:$false] %s811_s16 }
  0x19   : > { %v152_v2 = vld [vmem:[%s151_s28] sm:$0xff]  ;;  %v159_v3 = vsel %vm157_vm1, %v155_v1, 0  ;;  %s813_s17 = scalar_lea.vmem %s812_s16, 32  ;;  %p814_p0 = scmp.lt.s32.totalorder %s960_s4, %s812_s16 }
  0x1a   : > { %v162_v4 = vsel %vm157_vm1, %v152_v2, 0  ;;  %v230_v5 = vand.u32 4294901760, %v159_v3  ;;  %p815_p1 = scmp.lt.s32.totalorder %s813_s17, %s807_s14 }
  0x1b   : > { %v165_v6 = vand.u32 4294901760, %v162_v4 }
  0x1c   : > { %v231_v7 = vsub.f32 %v159_v3, %v230_v5  ;;  %p816_p2 = por %p815_p1, %p814_p0 }
  0x1d   : > { %v242_v8 = vsub.f32 %v162_v4, %v165_v6  ;;  %739 = vmatpush3.xpose.msra.mxu0 %v165_v6  ;;  %724 = vmatpush3.xpose.msra.mxu1 %v165_v6 }
  0x1e   : > { %v232_v9 = vand.u32 4294901760, %v231_v7  ;;  %728 = vmatprep.subr.mxu1 %v871_v0  ;;  %743 = vmatprep.subr.mxu0 %v871_v0  ;;  %p817_p3 = pnand %p816_p2, %p810_p13 }
  0x1f   : > { %v243_v10 = vand.u32 4294901760, %v242_v8 }
  0x20   : > { %741 = vmatmul.mubr.f32.vlgmr.msra.gmra.mrb[0].mxu0 %v232_v9  ;;  %v233_v11 = vsub.f32 %v231_v7, %v232_v9 }
  0x21   : > { %v244_v12 = vsub.f32 %v242_v8, %v243_v10  ;;  %744 = vmatpush3.xpose.msra.mxu0 %v243_v10  ;;  %745 = vmatprep.mubr.msk.f32.mxu0 %vm872_vm0, %v871_v0 }
  0x22   : > { %v234_v13 = vand.u32 4294901760, %v233_v11  ;;  %748 = vmatprep.subr.mxu0 %v871_v0 }
  0x23   : > { %v245_v14 = vand.u32 4294901760, %v244_v12 }
  0x24   : > { %726 = vmatmul.mubr.f32.vlgmr.msra.gmra.mrb[0].mxu1 %v234_v13 }
  0x25   : > { %729 = vmatpush3.xpose.msra.mxu1 %v245_v14  ;;  %730 = vmatprep.mubr.msk.f32.mxu1 %vm872_vm0, %v871_v0 }
  0x26   : > { %733 = vmatprep.subr.mxu1 %v871_v0 }
  0x28   : > { %746 = vmatmul.mubr.f32.vlgmr.msra.gmra.mrb[0].mxu0 %v230_v5 }
  0x29   : > { %749 = vmatpush3.xpose.msra.mxu0 %v165_v6  ;;  %750 = vmatprep.mubr.msk.f32.mxu0 %vm872_vm0, %v871_v0 }
  0x2c   : > { %731 = vmatmul.mubr.f32.vlgmr.msra.gmra.mrb[0].mxu1 %v230_v5 }
  0x2d   : > { %734 = vmatpush3.xpose.msra.mxu1 %v242_v8  ;;  %735 = vmatprep.mubr.msk.f32.mxu1 %vm872_vm0, %v871_v0 }
  0x30   : > { %751 = vmatmul.mubr.f32.vlgmr.msra.gmra.mrb[0].mxu0 %v230_v5 }
  0x34   : > { %736 = vmatmul.mubr.f32.vlgmr.msra.gmra.mrb[0].mxu1 %v231_v7 }
 0x103   : > { %v606_v15 = vpop.f32.mrb[0].mxu0 }
 0x104   : > { %v752_v16 = vpop.f32.mrb[1].mxu0 }
 0x107   : > { %v386_v17 = vpop.f32.mrb[0].mxu1 }
 0x108   : > { %v753_v18 = vadd.f32 %v606_v15, %v386_v17  ;;  %v737_v19 = vpop.f32.mrb[1].mxu1 }
 0x10a   : > { %v611_v20 = vsel %vm610_vm2, %v753_v18, -inf }
 0x10b   : > { %612 = vmax.xlane.f32.xlu0 %v611_v20 }
 0x198   : > { %v613_v21 = vpop.xlane.xlu0 %612 }
 0x199   : > { %v614_v22 = vsub.f32 %v753_v18, %v613_v21 }
 0x19b   : > { %v615_v23 = vmul.f32 1.442695, %v614_v22 }
 0x19d   : > { %803 = vpow2.f32 %v615_v23 }
 0x1a7   : > { %v804_v24 = vpop.eup %803 }
 0x1a8   : > { %v617_v25 = vsel %vm610_vm2, %v804_v24, 0.0 }
 0x1a9   : > { %618 = vadd.xlane.f32.xlu0 %v617_v25 }
 0x236   : > { %v619_v26 = vpop.xlane.xlu0 %618 }
 0x237   : > { %805 = vrcp.f32 %v619_v26 }
 0x241   : > { %v806_v27 = vpop.eup %805 }
 0x242   : > { %v621_v28 = vmul.f32 %v806_v27, %v619_v26 }
 0x244   : > { %v622_v29 = vsub.f32 2.0, %v621_v28 }
 0x246   : > { %v623_v30 = vmul.f32 %v806_v27, %v622_v29 }
 0x248   : > { %v624_v31 = vmul.f32 %v804_v24, %v623_v30 }
 0x24a   : > { %625 = vst.msk [vmem:[%s144_s3] sm:$0x1] %vm610_vm2, %v624_v31 }
 0x24b   : > { %820 = shalt.err (!%p817_p3)
}
 0x24c   : > { %s821_s21 = scalar_lea.hbm %s958_s7, 16  ;;  %s825_s24 = scalar_lea.hbm %s1003_s2, 32 }
 0x24d   : > { %p822_p4 = scmp.ne.s32.totalorder %s958_s7, %s821_s21  ;;  %p826_p9 = scmp.lt.u32.totalorder %s958_s7, %s1003_s2 }
 0x24e   : > { %p827_p10 = scmp.lt.u32.totalorder %s825_s24, %s821_s21  ;;  %p829_p12 = scmp.lt.u32.totalorder %s821_s21, %s958_s7 }
 0x24f   : > { %p823_p7 = pnand %p822_p4, %p927_p5 }
 0x250   : > { %p828_p11 = por %p827_p10, %p826_p9 }
 0x251   : > { %p824_p8 = pneg %p823_p7 }
 0x252   : > { %p830_p13 = por %p829_p12, %p828_p11 }
 0x254   : > { %p831_p0 = pnand %p830_p13, %p824_p8 }
 0x256   : > { %834 = shalt.err (!%p831_p0)
}
 0x257   : > { %762 = dma.vmem_to_hbm [thread:$0]  (%p927_p5), %s960_s4, 16, %s958_s7, %s627_s8  }
 0x258 PF: > { %p768_p1 = scmp.ge.s32.totalorder %s869_s12, 2  ;;  %s651_s27 = sand.u32 1, %s857_s9  }
 0x259   : > { %s652_s28 = scalar_lea.sflag [#allocation3], %s651_s27 }
 0x25a   : > { %p765_p2 = pnand %p768_p1, %p931_p6 }
 0x25c   : > { %852 = dma.done.wait (!%p765_p2), %s652_s28, 16  }
 0x25d   : > { %854 = vsyncadd (!%p765_p2), %s652_s28, 4294967280  ;;  %p12_p3 = scmp.ge.s32.totalorder %s914_s15, 4   ;;  %s1006_s9 = smov %s861_s10 }
 0x25e   : > { %s1007_s10 = smov %s865_s11  ;;  %s1008_s11 = smov %s925_s18 }
 0x25f   : > { %s1009_s12 = smov %s914_s15  ;;  %14 = sbr.rel (!%p12_p3) target bundleno = 3 (0x3), region = 66 }
 0x266   :  { %656 = vsyncpa [#allocation3], 1 }
 0x267   :  { %658 = vsyncpa [#allocation3 + $0x1], 1 }

</bundles_post_ra>
